<compile_context>
chip_gen: v7x
topology: tpu7x:2x2x1
jax: 0.10.0
libtpu: 0.0.40
codegen_flags: <defaults>
</compile_context>

<pallas_src>
import math

import jax
import jax.numpy as jnp
from jax.experimental import pallas as pl
from jax.experimental.pallas import tpu as pltpu


_GELU_C = math.sqrt(2.0 / math.pi)


def _gelu_tanh(x):
    # GELU with tanh approximation (matches torch.nn.GELU(approximate='tanh')).
    return 0.5 * x * (1.0 + jnp.tanh(_GELU_C * (x + 0.044715 * x * x * x)))


def mlp_kernel(x_ref, w_fc_ref, b_fc_ref, w_proj_ref, b_proj_ref, o_ref, acc_ref):
    # Grid: (i over token tiles [parallel], j over hidden tiles [arbitrary]).
    j = pl.program_id(1)

    @pl.when(j == 0)
    def _init():
        acc_ref[...] = jnp.zeros_like(acc_ref)

    # c_fc slice: (tm, C) @ (C, th) -> (tm, th) on the MXU, f32 accumulation.
    h = jnp.dot(x_ref[...], w_fc_ref[...], preferred_element_type=jnp.float32)
    h = h + b_fc_ref[...].astype(jnp.float32)          # (1, th) broadcasts over rows

    # GELU (tanh approx) in f32 — VPU/EUP work is free filler under the matmuls.
    g = _gelu_tanh(h)

    # c_proj partial: (tm, th) @ (th, C) -> (tm, C), accumulated in f32 scratch.
    acc_ref[...] += jnp.dot(g.astype(w_proj_ref.dtype), w_proj_ref[...],
                            preferred_element_type=jnp.float32)

    @pl.when(j == pl.num_programs(1) - 1)
    def _finalize():
        y = acc_ref[...] + b_proj_ref[...].astype(jnp.float32)
        o_ref[...] = y.astype(o_ref.dtype)


def _round_up(x, m):
    return ((x + m - 1) // m) * m


def _tpu_defaults():
    """Returns (generation, vmem_capacity_bytes, default_tm, default_th, num_tensorcores)."""
    kind = ""
    try:
        kind = jax.devices()[0].device_kind.lower()
    except Exception:
        pass
    vmem_cap = None
    try:
        vmem_cap = int(pltpu.get_tpu_info().vmem_capacity_bytes)
    except Exception:
        vmem_cap = None
    if "v7" in kind:
        # 64 MiB VMEM per TC, 2 TCs per chip.
        return "v7x", vmem_cap or (64 << 20), 1024, 512, 2
    if "v6" in kind:
        return "v6e", vmem_cap or (128 << 20), 1024, 1024, 1
    if "v5 lite" in kind or "v5lite" in kind or "v5e" in kind:
        return "v5e", vmem_cap or (128 << 20), 512, 512, 1
    # Unknown generation: be conservative about VMEM.
    return "unknown", vmem_cap or (64 << 20), 512, 512, 1


def _vmem_need_bytes(tm, th, c, in_itemsize, out_itemsize):
    """Rough per-step VMEM resident set (double-buffered tiles + f32 temporaries)."""
    acc = tm * c * 4                                    # f32 accumulator scratch
    io_tiles = 2 * tm * c * (in_itemsize + out_itemsize)  # double-buffered x / out tiles
    w_tiles = 4 * c * th * in_itemsize                  # double-buffered W_fc + W_proj tiles
    bias = 2 * (th + c) * 4
    temps = 3 * tm * th * 4 + tm * c * 4                # f32 GELU slab temporaries + partial dot
    return acc + io_tiles + w_tiles + bias + temps


def mlp_pallas(x, w_fc, b_fc, w_proj, b_proj, *, tm=None, th=None, matmul_dtype=None):
    """x: [B, T, C]; w_fc: [C, 4C]; b_fc: [4C]; w_proj: [4C, C]; b_proj: [C]."""
    B, T, C = x.shape
    Cin, H = w_fc.shape
    assert Cin == C and w_proj.shape == (H, C)
    assert b_fc.shape == (H,) and b_proj.shape == (C,)
    out_dtype = x.dtype
    M = B * T

    gen, vmem_cap, tm_default, th_default, num_tc = _tpu_defaults()
    if tm is None:
        tm = tm_default
    if th is None:
        th = th_default

    # bf16 fast path: f32 matmul runs far below MXU peak and doubles weight HBM
    # traffic; cast matmul operands to bf16 (f32 accumulation is kept).
    if matmul_dtype is None:
        matmul_dtype = jnp.bfloat16 if x.dtype == jnp.float32 else x.dtype
    matmul_dtype = jnp.dtype(matmul_dtype)
    in_itemsize = matmul_dtype.itemsize
    out_itemsize = jnp.dtype(out_dtype).itemsize

    # Row tile rounded to the dtype's sublane pack (16 for bf16, 8 for f32).
    row_align = max(8, 32 // in_itemsize)
    tm_eff = max(row_align, min(tm, _round_up(M, row_align)))

    # Hidden tile: multiple of 128, never bigger than the (128-aligned) H.
    th_eff = min(th, _round_up(H, 128))
    th_eff = max(128, (th_eff // 128) * 128)

    # Shrink tiles until the resident set fits the per-core VMEM budget
    # (v7x has only 64 MiB per TC; keep headroom for compiler scratch).
    budget = int(0.75 * vmem_cap)
    while _vmem_need_bytes(tm_eff, th_eff, C, in_itemsize, out_itemsize) > budget:
        if th_eff > 512:
            th_eff -= 128
        elif tm_eff > 256:
            tm_eff = max(row_align, _round_up(tm_eff // 2, row_align))
        elif th_eff > 128:
            th_eff -= 128
        elif tm_eff > row_align:
            tm_eff = max(row_align, _round_up(tm_eff // 2, row_align))
        else:
            break

    # Megacore check (v7x): keep at least one token tile per TensorCore.
    M_pad = _round_up(M, tm_eff)
    while num_tc > 1 and (M_pad // tm_eff) < num_tc and tm_eff > row_align:
        tm_eff = max(row_align, _round_up(tm_eff // 2, row_align))
        M_pad = _round_up(M, tm_eff)

    # Pad H to a multiple of th (zero columns of W_fc / zero b_fc entries give
    # GELU(0)=0, and the matching zero W_proj rows contribute nothing).
    H_pad = _round_up(H, th_eff)

    x2 = x.reshape(M, C).astype(matmul_dtype)
    if M_pad != M:
        x2 = jnp.pad(x2, ((0, M_pad - M), (0, 0)))

    w_fc_p = w_fc.astype(matmul_dtype)
    w_proj_p = w_proj.astype(matmul_dtype)
    b_fc_p = b_fc.astype(jnp.float32)
    if H_pad != H:
        w_fc_p = jnp.pad(w_fc_p, ((0, 0), (0, H_pad - H)))
        w_proj_p = jnp.pad(w_proj_p, ((0, H_pad - H), (0, 0)))
        b_fc_p = jnp.pad(b_fc_p, ((0, H_pad - H),))
    b_fc2 = b_fc_p.reshape(1, H_pad)
    b_proj2 = b_proj.astype(jnp.float32).reshape(1, C)

    grid = (M_pad // tm_eff, H_pad // th_eff)

    # Raise the scoped VMEM limit to match the tile budget (default is only
    # 16 MiB on v5e / 32 MiB on v6e/v7x).
    needed = _vmem_need_bytes(tm_eff, th_eff, C, in_itemsize, out_itemsize)
    vmem_limit = int(min(int(0.92 * vmem_cap), max(needed * 5 // 4, 32 << 20)))
    vmem_limit = max(vmem_limit, min(needed, int(0.92 * vmem_cap)))

    # Honest cost estimate: weights are re-read once per token tile.
    weight_bytes = (w_fc_p.size * w_fc_p.dtype.itemsize
                    + w_proj_p.size * w_proj_p.dtype.itemsize
                    + b_fc2.size * b_fc2.dtype.itemsize
                    + b_proj2.size * b_proj2.dtype.itemsize)
    bytes_accessed = (x2.size * x2.dtype.itemsize
                      + M_pad * C * out_itemsize
                      + grid[0] * weight_bytes)
    cost = pl.CostEstimate(
        flops=4 * M_pad * C * H_pad,            # two matmuls: 2*M*C*H each
        transcendentals=M_pad * H_pad,          # one tanh per hidden element
        bytes_accessed=bytes_accessed,
    )

    out = pl.pallas_call(
        mlp_kernel,
        out_shape=jax.ShapeDtypeStruct((M_pad, C), out_dtype),
        grid_spec=pltpu.PrefetchScalarGridSpec(
            num_scalar_prefetch=0,
            grid=grid,
            in_specs=[
                pl.BlockSpec((tm_eff, C), lambda i, j: (i, 0)),      # x rows (resident across j)
                pl.BlockSpec((C, th_eff), lambda i, j: (0, j)),      # W_fc column tile
                pl.BlockSpec((1, th_eff), lambda i, j: (0, j)),      # b_fc tile
                pl.BlockSpec((th_eff, C), lambda i, j: (j, 0)),      # W_proj row tile (contiguous)
                pl.BlockSpec((1, C), lambda i, j: (0, 0)),           # b_proj (constant)
            ],
            out_specs=pl.BlockSpec((tm_eff, C), lambda i, j: (i, 0)),
            scratch_shapes=[pltpu.VMEM((tm_eff, C), jnp.float32)],   # f32 accumulator
        ),
        compiler_params=pltpu.CompilerParams(
            dimension_semantics=("parallel", "arbitrary"),
            vmem_limit_bytes=vmem_limit,
        ),
        cost_estimate=cost,
    )(x2, w_fc_p, b_fc2, w_proj_p, b_proj2)

    if M_pad != M:
        out = out[:M]
    return out.reshape(B, T, C)


def mlp_reference(x, w_fc, b_fc, w_proj, b_proj):
    """Pure-JAX reference mirroring the kernel numerics (f32 accumulation)."""
    B, T, C = x.shape
    x2 = x.reshape(-1, C)
    h = jnp.dot(x2, w_fc, preferred_element_type=jnp.float32) + b_fc.astype(jnp.float32)
    g = _gelu_tanh(h)
    y = jnp.dot(g.astype(w_proj.dtype), w_proj, preferred_element_type=jnp.float32)
    y = y + b_proj.astype(jnp.float32)
    return y.astype(x.dtype).reshape(B, T, C)


if __name__ == "__main__":
    # Small config consistent with the module: n_embd=32, hidden = 4*32 = 128.
    B, T, C = 2, 8, 32
    H = 4 * C

    key = jax.random.PRNGKey(0)
    kx, kw1, kb1, kw2, kb2 = jax.random.split(key, 5)

    x = jax.random.normal(kx, (B, T, C), dtype=jnp.float32)

    # nn.Linear-ish init, stored as (in, out): kernel computes x @ W + b.
    s1 = 1.0 / math.sqrt(C)
    s2 = 1.0 / math.sqrt(H)
    w_fc = jax.random.uniform(kw1, (C, H), jnp.float32, -s1, s1)
    b_fc = jax.random.uniform(kb1, (H,), jnp.float32, -s1, s1)
    w_proj = jax.random.uniform(kw2, (H, C), jnp.float32, -s2, s2)
    b_proj = jax.random.uniform(kb2, (C,), jnp.float32, -s2, s2)

    y_ref = mlp_reference(x, w_fc, b_fc, w_proj, b_proj)

    # --- exact-f32 matmul path (tight tolerance) ---
    y = jax.block_until_ready(
        mlp_pallas(x, w_fc, b_fc, w_proj, b_proj, matmul_dtype=jnp.float32))
    assert y.shape == (B, T, C)
    assert jnp.allclose(y, y_ref, atol=1e-5, rtol=1e-5), "f32 mismatch vs reference"

    # --- default bf16 fast path on f32 inputs (bf16-class tolerance) ---
    y_fast = jax.block_until_ready(mlp_pallas(x, w_fc, b_fc, w_proj, b_proj))
    assert y_fast.shape == (B, T, C)
    assert jnp.allclose(y_fast, y_ref, atol=5e-2, rtol=5e-2), "bf16 fast path mismatch"

    # --- bf16 inputs (MXU-friendly dtypes, f32 accumulation) ---
    xb, wfb, bfb, wpb, bpb = (a.astype(jnp.bfloat16)
                              for a in (x, w_fc, b_fc, w_proj, b_proj))
    yb = jax.block_until_ready(mlp_pallas(xb, wfb, bfb, wpb, bpb))
    yb_ref = mlp_reference(xb, wfb, bfb, wpb, bpb)
    assert yb.shape == (B, T, C)
    assert jnp.allclose(yb.astype(jnp.float32), yb_ref.astype(jnp.float32),
                        atol=5e-2, rtol=5e-2), "bf16 mismatch vs reference"

    print("KERNEL_OK")
</pallas_src>

<mosaic_0001>
module attributes {stable_mosaic.version = 11 : i64} {
  func.func @mlp_kernel(%arg0: i32, %arg1: i32, %arg2: memref<16x32xf32, #tpu.memory_space<vmem>>, %arg3: memref<32x128xf32, #tpu.memory_space<vmem>>, %arg4: memref<1x128xf32, #tpu.memory_space<vmem>>, %arg5: memref<128x32xf32, #tpu.memory_space<vmem>>, %arg6: memref<1x32xf32, #tpu.memory_space<vmem>>, %arg7: memref<16x32xf32, #tpu.memory_space<vmem>>, %arg8: memref<16x32xf32, #tpu.memory_space<vmem>>) attributes {dimension_semantics = [#tpu.dimension_semantics<parallel>, #tpu.dimension_semantics<arbitrary>], iteration_bounds = array<i64: 1, 1>, scalar_prefetch = 0 : i64, scratch_operands = 1 : i64, tpu.core_type = #tpu.core_type<tc>, window_params = [{transform_indices = @transform_0, window_bounds = array<i64: 16, 32>}, {transform_indices = @transform_1, window_bounds = array<i64: 32, 128>}, {transform_indices = @transform_2, window_bounds = array<i64: 1, 128>}, {transform_indices = @transform_3, window_bounds = array<i64: 128, 32>}, {pipeline_mode = #tpu.pipeline_mode<synchronous>, transform_indices = @transform_4, window_bounds = array<i64: 1, 32>}, {transform_indices = @transform_5, window_bounds = array<i64: 16, 32>}]} {
    %c0_i32 = arith.constant 0 : i32
    %0 = arith.cmpi eq, %arg1, %c0_i32 : i32
    %1 = arith.extui %0 : i1 to i32
    %c0_i32_0 = arith.constant 0 : i32
    %2 = arith.cmpi ne, %1, %c0_i32_0 : i32
    scf.if %2 {
      %cst_19 = arith.constant 0.000000e+00 : f32
      %30 = vector.broadcast %cst_19 : f32 to vector<16x32xf32>
      %c0_20 = arith.constant 0 : index
      %c0_21 = arith.constant 0 : index
      %31 = vector.load %arg8[%c0_20, %c0_21] : memref<16x32xf32, #tpu.memory_space<vmem>>, vector<16x32xf32>
      tpu.vector_store %arg8[%c0_20, %c0_21], %30 {strides = array<i32>} : memref<16x32xf32, #tpu.memory_space<vmem>>, vector<16x32xf32>,
    } else {
    }
    %c0 = arith.constant 0 : index
    %c0_1 = arith.constant 0 : index
    %3 = vector.load %arg2[%c0, %c0_1] : memref<16x32xf32, #tpu.memory_space<vmem>>, vector<16x32xf32>
    %c0_2 = arith.constant 0 : index
    %c0_3 = arith.constant 0 : index
    %4 = vector.load %arg3[%c0_2, %c0_3] : memref<32x128xf32, #tpu.memory_space<vmem>>, vector<32x128xf32>
    %cst = arith.constant dense<0.000000e+00> : vector<16x128xf32>
    %5 = tpu.matmul %3, %4, %cst {dimension_numbers = #tpu.dot_dimension_numbers<[1], [0], [0], [1], [0, 0, 1, 1], [], []>} : vector<16x32xf32>, vector<32x128xf32>, vector<16x128xf32> -> vector<16x128xf32>
    %c0_4 = arith.constant 0 : index
    %c0_5 = arith.constant 0 : index
    %6 = vector.load %arg4[%c0_4, %c0_5] : memref<1x128xf32, #tpu.memory_space<vmem>>, vector<1x128xf32>
    %7 = vector.broadcast %6 : vector<1x128xf32> to vector<16x128xf32>
    %8 = arith.addf %5, %7 : vector<16x128xf32>
    %cst_6 = arith.constant 5.000000e-01 : f32
    %9 = vector.broadcast %cst_6 : f32 to vector<16x128xf32>
    %10 = arith.mulf %9, %8 : vector<16x128xf32>
    %cst_7 = arith.constant 4.471500e-02 : f32
    %11 = vector.broadcast %cst_7 : f32 to vector<16x128xf32>
    %12 = arith.mulf %11, %8 : vector<16x128xf32>
    %13 = arith.mulf %12, %8 : vector<16x128xf32>
    %14 = arith.mulf %13, %8 : vector<16x128xf32>
    %15 = arith.addf %8, %14 : vector<16x128xf32>
    %cst_8 = arith.constant 0.797884583 : f32
    %16 = vector.broadcast %cst_8 : f32 to vector<16x128xf32>
    %17 = arith.mulf %16, %15 : vector<16x128xf32>
    %18 = math.tanh %17 : vector<16x128xf32>
    %cst_9 = arith.constant 1.000000e+00 : f32
    %19 = vector.broadcast %cst_9 : f32 to vector<16x128xf32>
    %20 = arith.addf %19, %18 : vector<16x128xf32>
    %21 = arith.mulf %10, %20 : vector<16x128xf32>
    %c0_10 = arith.constant 0 : index
    %c0_11 = arith.constant 0 : index
    %22 = vector.load %arg8[%c0_10, %c0_11] : memref<16x32xf32, #tpu.memory_space<vmem>>, vector<16x32xf32>
    %c0_12 = arith.constant 0 : index
    %c0_13 = arith.constant 0 : index
    %23 = vector.load %arg5[%c0_12, %c0_13] : memref<128x32xf32, #tpu.memory_space<vmem>>, vector<128x32xf32>
    %cst_14 = arith.constant dense<0.000000e+00> : vector<16x32xf32>
    %24 = tpu.matmul %21, %23, %cst_14 {dimension_numbers = #tpu.dot_dimension_numbers<[1], [0], [0], [1], [0, 0, 1, 1], [], []>} : vector<16x128xf32>, vector<128x32xf32>, vector<16x32xf32> -> vector<16x32xf32>
    %25 = arith.addf %22, %24 : vector<16x32xf32>
    %c0_15 = arith.constant 0 : index
    %c0_16 = arith.constant 0 : index
    %26 = vector.load %arg8[%c0_15, %c0_16] : memref<16x32xf32, #tpu.memory_space<vmem>>, vector<16x32xf32>
    tpu.vector_store %arg8[%c0_15, %c0_16], %25 {strides = array<i32>} : memref<16x32xf32, #tpu.memory_space<vmem>>, vector<16x32xf32>,
    %c0_i32_17 = arith.constant 0 : i32
    %27 = arith.cmpi eq, %arg1, %c0_i32_17 : i32
    %28 = arith.extui %27 : i1 to i32
    %c0_i32_18 = arith.constant 0 : i32
    %29 = arith.cmpi ne, %28, %c0_i32_18 : i32
    scf.if %29 {
      %c0_19 = arith.constant 0 : index
      %c0_20 = arith.constant 0 : index
      %30 = vector.load %arg8[%c0_19, %c0_20] : memref<16x32xf32, #tpu.memory_space<vmem>>, vector<16x32xf32>
      %c0_21 = arith.constant 0 : index
      %c0_22 = arith.constant 0 : index
      %31 = vector.load %arg6[%c0_21, %c0_22] : memref<1x32xf32, #tpu.memory_space<vmem>>, vector<1x32xf32>
      %32 = vector.broadcast %31 : vector<1x32xf32> to vector<16x32xf32>
      %33 = arith.addf %30, %32 : vector<16x32xf32>
      %c0_23 = arith.constant 0 : index
      %c0_24 = arith.constant 0 : index
      %34 = vector.load %arg7[%c0_23, %c0_24] : memref<16x32xf32, #tpu.memory_space<vmem>>, vector<16x32xf32>
      tpu.vector_store %arg7[%c0_23, %c0_24], %33 {strides = array<i32>} : memref<16x32xf32, #tpu.memory_space<vmem>>, vector<16x32xf32>,
    } else {
    }
    return
  }
  func.func @transform_0(%arg0: i32, %arg1: i32) -> (i32, i32) {
    %c0_i32 = arith.constant 0 : i32
    %c0_i32_0 = arith.constant 0 : i32
    return %arg0, %c0_i32 : i32, i32
  }
  func.func @transform_1(%arg0: i32, %arg1: i32) -> (i32, i32) {
    %c0_i32 = arith.constant 0 : i32
    %c0_i32_0 = arith.constant 0 : i32
    return %c0_i32, %arg1 : i32, i32
  }
  func.func @transform_2(%arg0: i32, %arg1: i32) -> (i32, i32) {
    %c0_i32 = arith.constant 0 : i32
    %c0_i32_0 = arith.constant 0 : i32
    return %c0_i32, %arg1 : i32, i32
  }
  func.func @transform_3(%arg0: i32, %arg1: i32) -> (i32, i32) {
    %c0_i32 = arith.constant 0 : i32
    %c0_i32_0 = arith.constant 0 : i32
    return %arg1, %c0_i32 : i32, i32
  }
  func.func @transform_4(%arg0: i32, %arg1: i32) -> (i32, i32) {
    %c0_i32 = arith.constant 0 : i32
    %c0_i32_0 = arith.constant 0 : i32
    %c0_i32_1 = arith.constant 0 : i32
    return %c0_i32, %c0_i32_0 : i32, i32
  }
  func.func @transform_5(%arg0: i32, %arg1: i32) -> (i32, i32) {
    %c0_i32 = arith.constant 0 : i32
    %c0_i32_0 = arith.constant 0 : i32
    return %arg0, %c0_i32 : i32, i32
  }
}

</mosaic_0001>

<bundles_post_ra>
// kernel: tpu_custom_call.1
= control target key start
LH: loop header
LB: loop body
LE: loop exit
PB: predicated region body
PF: predicated region fallthrough
CT: control target
= control target key end

     0   :  { %vm25_vm0 = vcmask 261120   ;;  %s542_s0 = inlined_call_operand.vmem [shape: f32[16,32], index: 0, kind: input, shape index: {}]   ;;  %s543_s1 = inlined_call_operand.vmem [shape: f32[32,128], index: 1, kind: input, shape index: {}]   ;;  %s544_s2 = inlined_call_operand.vmem [shape: f32[1,128], index: 2, kind: input, shape index: {}]   ;;  %s545_s3 = inlined_call_operand.vmem [shape: f32[128,32], index: 3, kind: input, shape index: {}]   ;;  %s546_s4 = inlined_call_operand.vmem [shape: f32[1,32], index: 4, kind: input, shape index: {}]   ;;  %s547_s5 = inlined_call_operand.hbm [shape: f32[16,32], index: 5, kind: output, shape index: {}]  }
   0x1   :  { %v30_v0 = vld [vmem:[%s543_s1] sm:$0xff]  ;;  %v31_v1 = vld [vmem:[%s543_s1 + $0x8] sm:$0xff]  ;;  %v32_v2 = vld [vmem:[%s543_s1 + $0x10] sm:$0xff] }
   0x2   :  { %v344_v3 = vpack.c.bf16 %v31_v1, %v30_v0  ;;  %v33_v4 = vld [vmem:[%s543_s1 + $0x18] sm:$0xff]  ;;  %v28_v5 = vld [vmem:[%s542_s0] sm:$0xff]  ;;  %v144_v8 = vld [vmem:[%s545_s3 + $0x8] sm:$0xff] }
   0x3   :  { %v348_v6 = vpack.c.bf16 %v33_v4, %v32_v2  ;;  %306 = vmatprep.mubr.msk.f32.mxu0 %vm25_vm0, %v28_v5  ;;  %v143_v7 = vld [vmem:[%s545_s3] sm:$0xff] }
   0x4   :  { %10 = vsyncpa [#allocation4], 0  ;;  %345 = vmatprep.subr.bf16.mxu0 %v344_v3  ;;  %v352_v9 = vpack.c.bf16 %v144_v8, %v143_v7  ;;  %v29_v10 = vld [vmem:[%s542_s0 + $0x8] sm:$0xff]  ;;  %v145_v11 = vld [vmem:[%s545_s3 + $0x10] sm:$0xff]  ;;  %v416_v32 = vmov 0.0   ;;  %s417_s11 = smov [#allocation3]  }
   0x5   :  { %347 = vmatpush3.bf16.msra.mxu0 %v344_v3  ;;  %v146_v12 = vld [vmem:[%s545_s3 + $0x18] sm:$0xff]  ;;  %v147_v14 = vld [vmem:[%s545_s3 + $0x20] sm:$0xff]  ;;  %v148_v15 = vld [vmem:[%s545_s3 + $0x28] sm:$0xff]  ;;  %27 = vst.msk [vmem:[#allocation2 + $0x8] sm:$0xff] %vm25_vm0, %v416_v32  ;;  %s259_s12 = sshll.u32 %s417_s11, 4  ;;  %s260_s12 = int_to_ptr.vmem [resolvable:$true] %s259_s12 }
   0x6   :  { %349 = vmatprep.subr.bf16.mxu0 %v348_v6  ;;  %353 = vmatprep.subr.bf16.mxu1 %v352_v9  ;;  %v356_v13 = vpack.c.bf16 %v146_v12, %v145_v11  ;;  %v360_v16 = vpack.c.bf16 %v148_v15, %v147_v14  ;;  %v149_v17 = vld [vmem:[%s545_s3 + $0x30] sm:$0xff]  ;;  %v150_v18 = vld [vmem:[%s545_s3 + $0x38] sm:$0xff]  ;;  %v151_v19 = vld [vmem:[%s545_s3 + $0x40] sm:$0xff]  ;;  %26 = vst.msk [vmem:[#allocation2] sm:$0xff] %vm25_vm0, %v416_v32  ;;  %s392_s13 = scalar_lea.vmem %s260_s12, 256  ;;  %p397_p1 = scmp.lt.s32.totalorder %s260_s12, %s260_s12 }
   0x7   :  { %355 = vmatpush3.bf16.msra.mxu1 %v352_v9  ;;  %v364_v20 = vpack.c.bf16 %v150_v18, %v149_v17  ;;  %v152_v21 = vld [vmem:[%s545_s3 + $0x48] sm:$0xff]  ;;  %v153_v23 = vld [vmem:[%s545_s3 + $0x50] sm:$0xff]  ;;  %v154_v24 = vld [vmem:[%s545_s3 + $0x58] sm:$0xff]  ;;  %p393_p0 = scmp.ne.s32.totalorder %s260_s12, %s392_s13  ;;  %p398_p2 = scmp.lt.s32.totalorder %s392_s13, %s392_s13 }
   0x8   :  { %357 = vmatprep.subr.bf16.mxu1 %v356_v13  ;;  %v368_v22 = vpack.c.bf16 %v152_v21, %v151_v19  ;;  %v372_v25 = vpack.c.bf16 %v154_v24, %v153_v23  ;;  %v155_v26 = vld [vmem:[%s545_s3 + $0x60] sm:$0xff]  ;;  %v156_v27 = vld [vmem:[%s545_s3 + $0x68] sm:$0xff]  ;;  %v157_v29 = vld [vmem:[%s545_s3 + $0x70] sm:$0xff] }
   0x9   :  { %351 = vmatpush3.bf16.msra.mxu0 %v348_v6  ;;  %v376_v28 = vpack.c.bf16 %v156_v27, %v155_v26  ;;  %v158_v30 = vld [vmem:[%s545_s3 + $0x78] sm:$0xff]  ;;  %v270_v33 = vld [vmem:[%s544_s2] ss:$0 sm:$0xff]  ;;  %p399_p3 = por %p398_p2, %p397_p1 }
   0xa   :  { %v380_v31 = vpack.c.bf16 %v158_v30, %v157_v29  ;;  %v273_v62 = vld [vmem:[%s546_s4] ss:$0 sm:$0xff] }
   0xb   :  { %359 = vmatpush3.bf16.msra.mxu1 %v356_v13  ;;  %p400_p4 = pnand %p399_p3, %p393_p0 }
   0xc   :  { %307 = vmatmul.mubr.msk.f32.vlgmr.msra.gmra.mrb[0].mxu0 %vm25_vm0, %v29_v10  ;;  %361 = vmatprep.subr.bf16.mxu1 %v360_v16  ;;  %v142_v56 = vld [vmem:[#allocation2 + $0x8] sm:$0xff] }
   0xd   :  { %v141_v57 = vld [vmem:[#allocation2] sm:$0xff] }
   0xf   :  { %363 = vmatpush3.bf16.msra.mxu1 %v360_v16 }
  0x10   :  { %365 = vmatprep.subr.bf16.mxu1 %v364_v20 }
  0x13   :  { %367 = vmatpush3.bf16.msra.mxu1 %v364_v20 }
  0x14   :  { %369 = vmatprep.subr.bf16.mxu1 %v368_v22 }
  0x17   :  { %371 = vmatpush3.bf16.msra.mxu1 %v368_v22 }
  0x18   :  { %373 = vmatprep.subr.bf16.mxu1 %v372_v25 }
  0x1b   :  { %375 = vmatpush3.bf16.msra.mxu1 %v372_v25 }
  0x1c   :  { %377 = vmatprep.subr.bf16.mxu1 %v376_v28 }
  0x1f   :  { %379 = vmatpush3.bf16.msra.mxu1 %v376_v28 }
  0x20   :  { %381 = vmatprep.subr.bf16.mxu1 %v380_v31 }
  0x23   :  { %383 = vmatpush3.bf16.msra.mxu1 %v380_v31 }
  0xdf   :  { %v308_v34 = vpop.f32.mrb[0].mxu0 }
  0xe0   :  { %v120_v35 = vadd.f32 %v308_v34, %v270_v33  ;;  %v114_v36 = vpop.f32.mrb[1].mxu0 }
  0xe1   :  { %v115_v37 = vadd.f32 %v270_v33, %v114_v36 }
  0xe2   :  { %v126_v38 = vmul.f32 0.044715, %v120_v35  ;;  %v124_v53 = vmul.f32 0.5, %v120_v35 }
  0xe3   :  { %v125_v39 = vmul.f32 0.044715, %v115_v37  ;;  %v123_v51 = vmul.f32 0.5, %v115_v37 }
  0xe4   :  { %v128_v40 = vmul.f32 %v126_v38, %v120_v35 }
  0xe5   :  { %v127_v41 = vmul.f32 %v125_v39, %v115_v37 }
  0xe6   :  { %v130_v42 = vmul.f32 %v128_v40, %v120_v35 }
  0xe7   :  { %v129_v43 = vmul.f32 %v127_v41, %v115_v37 }
  0xe8   :  { %v132_v44 = vadd.f32 %v130_v42, %v120_v35 }
  0xe9   :  { %v131_v45 = vadd.f32 %v129_v43, %v115_v37 }
  0xea   :  { %v134_v46 = vmul.f32 0.7978846, %v132_v44 }
  0xeb   :  { %v133_v47 = vmul.f32 0.7978846, %v131_v45 }
  0xec   :  { %388 = vtanh.f32 %v134_v46 }
  0xed   :  { %390 = vtanh.f32 %v133_v47 }
  0xf6   :  { %v389_v48 = vpop.eup %388 }
  0xf7   :  { %v391_v49 = vpop.eup %390  ;;  %v138_v50 = vadd.f32 1.0, %v389_v48 }
  0xf8   :  { %v137_v52 = vadd.f32 1.0, %v391_v49 }
  0xf9   :  { %v140_v55 = vmul.f32 %v138_v50, %v124_v53 }
  0xfa   :  { %v139_v54 = vmul.f32 %v137_v52, %v123_v51 }
  0xfc   :  { %341 = vmatprep.mubr.f32.mxu1 %v139_v54 }
  0xfd   :  { %342 = vmatmul.mubr.f32.vlgmr.msra.gmra.mrb[0].mxu1 %v140_v55 }
 0x1d0   :  { %v343_v58 = vpop.f32.mrb[0].mxu1 }
 0x1d1   :  { %v235_v59 = vadd.f32 %v343_v58, %v142_v56  ;;  %v225_v60 = vpop.f32.mrb[1].mxu1 }
 0x1d2   :  { %v234_v61 = vadd.f32 %v225_v60, %v141_v57 }
 0x1d3   :  { %237 = vst.msk [vmem:[#allocation2 + $0x8] sm:$0xff] %vm25_vm0, %v235_v59 }
 0x1d4   :  { %236 = vst.msk [vmem:[#allocation2] sm:$0xff] %vm25_vm0, %v234_v61 }
 0x1da   :  { %v242_v63 = vld [vmem:[#allocation2 + $0x8] sm:$0xff] }
 0x1db   :  { %v241_v0 = vld [vmem:[#allocation2] sm:$0xff]  ;;  %v251_v1 = vadd.f32 %v273_v62, %v242_v63 }
 0x1dc   :  { %v250_v2 = vadd.f32 %v273_v62, %v241_v0 }
 0x1dd   :  { %253 = vst.msk [vmem:[#allocation3 + $0x8] sm:$0xff] %vm25_vm0, %v251_v1 }
 0x1de   :  { %252 = vst.msk [vmem:[#allocation3] sm:$0xff] %vm25_vm0, %v250_v2 }
 0x1df   :  { %403 = shalt.err (!%p400_p4)
}
 0x1e0   :  { %s404_s15 = scalar_lea.hbm %s547_s5, 256 }
 0x1e1   :  { %p405_p5 = scmp.ne.s32.totalorder %s547_s5, %s404_s15  ;;  %p408_p6 = scmp.lt.u32.totalorder %s404_s15, %s547_s5 }
 0x1e3   :  { %p410_p7 = pnand %p408_p6, %p405_p5 }
 0x1e5   :  { %413 = shalt.err (!%p410_p7)
}
 0x1e6   :  { %s418_s19 = smov 128   ;;  %s419_s20 = smov 8  }
 0x1e7   :  { %265 = dma.vmem_to_hbm [thread:$0]  %s260_s12, 256, %s547_s5, [#allocation4], %s418_s19, %s418_s19, %s419_s20  }
 0x1e8   :  { %414 = dma.done.wait [#allocation4], 256  }
 0x1e9   :  { %415 = vsyncadd [#allocation4], 4294967040 }
 0x1ea   :  { %269 = vsyncpa [#allocation4], 1 }

</bundles_post_ra>
